<compile_context>
chip_gen: v7x
topology: tpu7x:2x2x1
jax: 0.10.0
libtpu: 0.0.40
codegen_flags: <defaults>
</compile_context>

<pallas_src>
import jax
import jax.numpy as jnp
from jax.experimental import pallas as pl
from jax.experimental.pallas import tpu as pltpu  # noqa: F401  (TPU backend)


def addmm_kernel(bias_ref, w_ref, x_ref, out_ref):
    # out = bias + weights @ x, with K so small (3) that the contraction is
    # cheaper as K broadcast multiply-adds on the VPU than as an MXU matmul
    # (avoids padding K to 128 and the MXU result-FIFO drain entirely).
    w = w_ref[...].astype(jnp.float32)        # (M, K)  in-kernel upcast
    x = x_ref[...].astype(jnp.float32)        # (K, N)  in-kernel upcast
    acc = bias_ref[...].astype(jnp.float32)   # (M, N)  f32 accumulator
    K = w.shape[1]                            # static -> Python loop unrolls
    for k in range(K):
        # (M,1) lane-broadcast  *  (1,N) sublane-broadcast  -> (M,N) FMA
        acc = acc + w[:, k:k + 1] * x[k:k + 1, :]
    out_ref[...] = acc.astype(out_ref.dtype)


@jax.jit
def cat_addmm(bias, weights, x2):
    """Computes torch.addmm(bias, weights, torch.cat([x2], dim=1)).

    The single-tensor cat is the identity.  x2 (1, C, 3, 3) is presented to
    addmm as the (K, N) matrix with K = 3 and N = C * 3 so the large dimension
    lands on the lane axis of the output block (layout plumbing only).
    """
    M, K = weights.shape
    v1 = x2.reshape(-1, K).T                  # (1, C, 3, 3) -> (K, N)
    Kx, N = v1.shape
    assert K == Kx and bias.shape == (M, N)

    # Single full-extent block, no grid: the whole working set is ~20 KiB, so
    # tiling / megacore split would be pure launch+sync overhead.
    return pl.pallas_call(
        addmm_kernel,
        out_shape=jax.ShapeDtypeStruct((M, N), bias.dtype),
        in_specs=[
            pl.BlockSpec((M, N), lambda: (0, 0)),   # bias (aliased to output)
            pl.BlockSpec((M, K), lambda: (0, 0)),   # weights
            pl.BlockSpec((K, N), lambda: (0, 0)),   # v1 == cat([x2], dim=1)
        ],
        out_specs=pl.BlockSpec((M, N), lambda: (0, 0)),
        input_output_aliases={0: 0},                # reuse bias buffer for out
        cost_estimate=pl.CostEstimate(
            flops=2 * M * K * N,
            bytes_accessed=4 * (M * K + K * N + 2 * M * N),
            transcendentals=0,
        ),
    )(bias, weights, v1)


if __name__ == "__main__":
    key = jax.random.PRNGKey(0)
    k_w, k_x, k_b = jax.random.split(key, 3)

    C = 512                                    # module's x2 = randn(1, 512, 3, 3)
    M, K, N = 3, 3, C * 3                      # N = 1536 (multiple of 128)

    weights = jax.random.normal(k_w, (M, K), dtype=jnp.float32)   # Parameter(randn(3,3))
    x2 = jax.random.normal(k_x, (1, C, 3, 3), dtype=jnp.float32)  # module input
    bias = jax.random.normal(k_b, (M, N), dtype=jnp.float32)      # stands in for `input`

    out = cat_addmm(bias, weights, x2)
    jax.block_until_ready(out)

    # sanity check against plain JAX reference (addmm semantics)
    ref = bias + weights @ x2.reshape(-1, K).T
    assert jnp.allclose(out, ref, atol=1e-5, rtol=1e-5)

    print("KERNEL_OK")
</pallas_src>

<mosaic_0001>
module attributes {stable_mosaic.version = 11 : i64} {
  func.func @addmm_kernel(%arg0: memref<3x1536xf32, #tpu.memory_space<vmem>>, %arg1: memref<3x3xf32, #tpu.memory_space<vmem>>, %arg2: memref<3x1536xf32, #tpu.memory_space<vmem>>, %arg3: memref<3x1536xf32, #tpu.memory_space<vmem>>) attributes {dimension_semantics = [], scalar_prefetch = 0 : i64, scratch_operands = 0 : i64, tpu.core_type = #tpu.core_type<tc>} {
    %c0 = arith.constant 0 : index
    %c0_0 = arith.constant 0 : index
    %0 = vector.load %arg1[%c0, %c0_0] : memref<3x3xf32, #tpu.memory_space<vmem>>, vector<3x3xf32>
    %c0_1 = arith.constant 0 : index
    %c0_2 = arith.constant 0 : index
    %1 = vector.load %arg2[%c0_1, %c0_2] : memref<3x1536xf32, #tpu.memory_space<vmem>>, vector<3x1536xf32>
    %c0_3 = arith.constant 0 : index
    %c0_4 = arith.constant 0 : index
    %2 = vector.load %arg0[%c0_3, %c0_4] : memref<3x1536xf32, #tpu.memory_space<vmem>>, vector<3x1536xf32>
    %3 = vector.extract_strided_slice %0 {offsets = [0, 0], sizes = [3, 1], strides = [1, 1]} : vector<3x3xf32> to vector<3x1xf32>
    %4 = vector.extract_strided_slice %1 {offsets = [0, 0], sizes = [1, 1536], strides = [1, 1]} : vector<3x1536xf32> to vector<1x1536xf32>
    %5 = vector.broadcast %3 : vector<3x1xf32> to vector<3x1536xf32>
    %6 = vector.broadcast %4 : vector<1x1536xf32> to vector<3x1536xf32>
    %7 = arith.mulf %5, %6 : vector<3x1536xf32>
    %8 = arith.addf %2, %7 : vector<3x1536xf32>
    %9 = vector.extract_strided_slice %0 {offsets = [0, 1], sizes = [3, 1], strides = [1, 1]} : vector<3x3xf32> to vector<3x1xf32>
    %10 = vector.extract_strided_slice %1 {offsets = [1, 0], sizes = [1, 1536], strides = [1, 1]} : vector<3x1536xf32> to vector<1x1536xf32>
    %11 = vector.broadcast %9 : vector<3x1xf32> to vector<3x1536xf32>
    %12 = vector.broadcast %10 : vector<1x1536xf32> to vector<3x1536xf32>
    %13 = arith.mulf %11, %12 : vector<3x1536xf32>
    %14 = arith.addf %8, %13 : vector<3x1536xf32>
    %15 = vector.extract_strided_slice %0 {offsets = [0, 2], sizes = [3, 1], strides = [1, 1]} : vector<3x3xf32> to vector<3x1xf32>
    %16 = vector.extract_strided_slice %1 {offsets = [2, 0], sizes = [1, 1536], strides = [1, 1]} : vector<3x1536xf32> to vector<1x1536xf32>
    %17 = vector.broadcast %15 : vector<3x1xf32> to vector<3x1536xf32>
    %18 = vector.broadcast %16 : vector<1x1536xf32> to vector<3x1536xf32>
    %19 = arith.mulf %17, %18 : vector<3x1536xf32>
    %20 = arith.addf %14, %19 : vector<3x1536xf32>
    %c0_5 = arith.constant 0 : index
    %c0_6 = arith.constant 0 : index
    %21 = vector.load %arg3[%c0_5, %c0_6] : memref<3x1536xf32, #tpu.memory_space<vmem>>, vector<3x1536xf32>
    tpu.vector_store %arg3[%c0_5, %c0_6], %20 {strides = array<i32>} : memref<3x1536xf32, #tpu.memory_space<vmem>>, vector<3x1536xf32>,
    return
  }
}

</mosaic_0001>

<bundles_post_ra>
// kernel: cat_addmm.1
= control target key start
LH: loop header
LB: loop body
LE: loop exit
PB: predicated region body
PF: predicated region fallthrough
CT: control target
= control target key end

     0   :  { %8 = vsyncpa [#allocation3], 0  ;;  %s800_s0 = inlined_call_operand.hbm [shape: f32[3,1536], index: 0, kind: input, shape index: {}, may-alias: {0,3}]   ;;  %s801_s1 = inlined_call_operand.vmem [shape: f32[3,3], index: 1, kind: input, shape index: {}]   ;;  %s802_s2 = inlined_call_operand.vmem [shape: f32[3,1536], index: 2, kind: input, shape index: {}]   ;;  %s803_s3 = inlined_call_operand.hbm [shape: f32[3,1536], index: 3, kind: output, shape index: {}, may-alias: {0,3}]  }
   0x1   :  { %9 = vsyncpa [#allocation4], 0  ;;  %s587_s12 = smov [#allocation2]   ;;  %s539_s16 = scalar_lea.hbm %s800_s0, 768 }
   0x2   :  { %s16_s13 = sshll.u32 %s587_s12, 4  ;;  %p540_p0 = scmp.ne.s32.totalorder %s800_s0, %s539_s16  ;;  %s17_s13 = int_to_ptr.vmem [resolvable:$true] %s16_s13 }
   0x3   :  { %p543_p1 = scmp.lt.u32.totalorder %s539_s16, %s800_s0 }
   0x5   :  { %p545_p2 = pnand %p543_p1, %p540_p0 }
   0x7   :  { %548 = shalt.err (!%p545_p2)
}
   0x8   :  { %s549_s21 = scalar_lea.vmem %s17_s13, 768  ;;  %p554_p4 = scmp.lt.s32.totalorder %s17_s13, %s17_s13 }
   0x9   :  { %p550_p3 = scmp.ne.s32.totalorder %s17_s13, %s549_s21  ;;  %p555_p5 = scmp.lt.s32.totalorder %s549_s21, %s549_s21 }
   0xb   :  { %p556_p6 = por %p555_p5, %p554_p4 }
   0xd   :  { %p557_p7 = pnand %p556_p6, %p550_p3 }
   0xf   :  { %560 = shalt.err (!%p557_p7)
}
  0x10   :  { %19 = dma.hbm_to_vmem [thread:$0]  %s800_s0, 768, %s17_s13, [#allocation3]  }
  0x11   :  { %583 = dma.done.wait [#allocation3], 768  }
  0x12   :  { %584 = vsyncadd [#allocation3], 4294966528  ;;  %v588_v0 = vmov 0   ;;  %v589_v1 = vmov 2   ;;  %v27_v2 = vld [vmem:[%s801_s1] sm:$0x7]  ;;  %v51_v4 = vlaneseq }
  0x13   :  { %535 = vset.pattern.permute.xlu0 %v588_v0  ;;  %537 = vset.pattern.permute.xlu1 %v589_v1  ;;  %v590_v3 = vmov 1   ;;  %v630_v8 = vld [vmem:[%s802_s2] sm:$0x77]  ;;  %v635_v9 = vld [vmem:[%s802_s2 + $0x8] sm:$0x77] }
  0x14   :  { %42 = vperm.xlu0 %535, %v27_v2   ;;  %356 = vperm.xlu1 %537, %v27_v2   ;;  %v52_v5 = vshrl.u32 %v51_v4, 7  ;;  %v640_v10 = vld [vmem:[%s802_s2 + $0x10] sm:$0x77]  ;;  %v645_v11 = vld [vmem:[%s802_s2 + $0x18] sm:$0x77] }
  0x15   :  { %v650_v12 = vld [vmem:[%s802_s2 + $0x20] sm:$0x77]  ;;  %v657_v15 = vld [vmem:[%s802_s2 + $0x28] sm:$0x77]  ;;  %s591_s2 = smov [#allocation5]  }
  0x16   :  { %v53_v6 = vsub.s32 0, %v52_v5  ;;  %v57_v7 = vsub.s32 4, %v52_v5  ;;  %v207_v24 = vsub.s32 1, %v52_v5  ;;  %v211_v25 = vsub.s32 5, %v52_v5  ;;  %s521_s9 = sshll.u32 %s591_s2, 4  ;;  %s522_s9 = int_to_ptr.vmem [resolvable:$true] %s521_s9 }
  0x17   :  { %v361_v48 = vsub.s32 2, %v52_v5  ;;  %v365_v49 = vsub.s32 6, %v52_v5  ;;  %s561_s10 = scalar_lea.vmem %s522_s9, 768  ;;  %p566_p9 = scmp.lt.s32.totalorder %s522_s9, %s522_s9 }
  0x18   :  { %536 = vset.pattern.permute.xlu0 %v590_v3  ;;  %v54_v13 = vrot.slane %v630_v8, %v53_v6  ;;  %v58_v14 = vrot.slane %v630_v8, %v57_v7  ;;  %v62_v16 = vrot.slane %v635_v9, %v53_v6  ;;  %v66_v17 = vrot.slane %v635_v9, %v57_v7  ;;  %p562_p8 = scmp.ne.s32.totalorder %s522_s9, %s561_s10  ;;  %p567_p10 = scmp.lt.s32.totalorder %s561_s10, %s561_s10 }
  0x19   :  { %202 = vperm.xlu0 %536, %v27_v2   ;;  %v70_v18 = vrot.slane %v640_v10, %v53_v6  ;;  %v74_v19 = vrot.slane %v640_v10, %v57_v7  ;;  %v78_v20 = vrot.slane %v645_v11, %v53_v6  ;;  %v82_v21 = vrot.slane %v645_v11, %v57_v7 }
  0x1a   :  { %v86_v22 = vrot.slane %v650_v12, %v53_v6  ;;  %v90_v23 = vrot.slane %v650_v12, %v57_v7  ;;  %v94_v26 = vrot.slane %v657_v15, %v53_v6  ;;  %v98_v27 = vrot.slane %v657_v15, %v57_v7  ;;  %p568_p11 = por %p567_p10, %p566_p9 }
  0x1b   :  { %v669_v28 = vrot.slane %v54_v13, %v53_v6  ;;  %v671_v29 = vrot.slane %v58_v14, %v53_v6  ;;  %v673_v30 = vrot.slane %v62_v16, %v53_v6  ;;  %v675_v31 = vrot.slane %v66_v17, %v53_v6 }
  0x1c   :  { %v677_v32 = vrot.slane %v70_v18, %v53_v6  ;;  %v679_v33 = vrot.slane %v74_v19, %v53_v6  ;;  %v681_v34 = vrot.slane %v78_v20, %v53_v6  ;;  %v683_v35 = vrot.slane %v82_v21, %v53_v6  ;;  %p569_p12 = pnand %p568_p11, %p562_p8 }
  0x1d   :  { %538 = vset.pattern.permute.xlu0 %v589_v1  ;;  %v685_v36 = vrot.slane %v86_v22, %v53_v6  ;;  %v687_v37 = vrot.slane %v90_v23, %v53_v6  ;;  %v208_v38 = vrot.slane %v630_v8, %v207_v24  ;;  %v212_v39 = vrot.slane %v630_v8, %v211_v25 }
  0x1e   :  { %v216_v40 = vrot.slane %v635_v9, %v207_v24  ;;  %v220_v41 = vrot.slane %v635_v9, %v211_v25  ;;  %v224_v42 = vrot.slane %v640_v10, %v207_v24  ;;  %v228_v43 = vrot.slane %v640_v10, %v211_v25 }
  0x1f   :  { %v232_v44 = vrot.slane %v645_v11, %v207_v24  ;;  %v236_v45 = vrot.slane %v645_v11, %v211_v25  ;;  %v154_v46 = vrot.slane %v94_v26, %v53_v6  ;;  %v158_v47 = vrot.slane %v98_v27, %v53_v6 }
  0x20   :  { %v240_v50 = vrot.slane %v650_v12, %v207_v24  ;;  %v244_v51 = vrot.slane %v650_v12, %v211_v25  ;;  %v248_v52 = vrot.slane %v657_v15, %v207_v24  ;;  %v252_v53 = vrot.slane %v657_v15, %v211_v25 }
  0x21   :  { %v701_v54 = vrot.slane %v208_v38, %v207_v24  ;;  %v703_v55 = vrot.slane %v212_v39, %v207_v24  ;;  %v705_v56 = vrot.slane %v216_v40, %v207_v24  ;;  %v707_v57 = vrot.slane %v220_v41, %v207_v24 }
  0x22   :  { %v709_v58 = vrot.slane %v224_v42, %v207_v24  ;;  %v711_v59 = vrot.slane %v228_v43, %v207_v24  ;;  %v713_v60 = vrot.slane %v232_v44, %v207_v24  ;;  %v715_v61 = vrot.slane %v236_v45, %v207_v24  ;;  %v34_v42 = vld [vmem:[#allocation2] sm:$0x77] }
  0x23   :  { %v362_v62 = vrot.slane %v630_v8, %v361_v48  ;;  %v366_v63 = vrot.slane %v630_v8, %v365_v49  ;;  %v370_v0 = vrot.slane %v635_v9, %v361_v48  ;;  %v374_v1 = vrot.slane %v635_v9, %v365_v49 }
  0x24   :  { %v378_v2 = vrot.slane %v640_v10, %v361_v48  ;;  %v382_v3 = vrot.slane %v640_v10, %v365_v49  ;;  %v386_v4 = vrot.slane %v645_v11, %v361_v48  ;;  %v390_v5 = vrot.slane %v645_v11, %v365_v49 }
  0x25   :  { %v394_v6 = vrot.slane %v650_v12, %v361_v48  ;;  %v398_v7 = vrot.slane %v650_v12, %v365_v49  ;;  %v402_v13 = vrot.slane %v657_v15, %v361_v48  ;;  %v406_v8 = vrot.slane %v657_v15, %v365_v49  ;;  %v35_v49 = vld [vmem:[#allocation2 + $0x8] sm:$0x77] }
  0x26   :  { %v300_v14 = vrot.slane %v240_v50, %v207_v24  ;;  %v304_v16 = vrot.slane %v244_v51, %v207_v24  ;;  %v308_v17 = vrot.slane %v248_v52, %v207_v24  ;;  %v312_v9 = vrot.slane %v252_v53, %v207_v24  ;;  %v36_v50 = vld [vmem:[#allocation2 + $0x10] sm:$0x77]  ;;  %v38_v52 = vld [vmem:[#allocation2 + $0x20] sm:$0x77]  ;;  %v39_v53 = vld [vmem:[#allocation2 + $0x28] sm:$0x77] }
  0x27   :  { %v422_v18 = vrot.slane %v362_v62, %v361_v48  ;;  %v426_v19 = vrot.slane %v366_v63, %v361_v48  ;;  %v430_v20 = vrot.slane %v370_v0, %v361_v48  ;;  %v729_v10 = vrot.slane %v374_v1, %v361_v48 }
  0x28   :  { %v731_v21 = vrot.slane %v378_v2, %v361_v48  ;;  %v733_v11 = vrot.slane %v382_v3, %v361_v48  ;;  %v735_v22 = vrot.slane %v386_v4, %v361_v48  ;;  %v737_v12 = vrot.slane %v390_v5, %v361_v48 }
  0x29   :  { %v739_v25 = vrot.slane %v394_v6, %v361_v48  ;;  %v741_v15 = vrot.slane %v398_v7, %v361_v48  ;;  %v743_v26 = vrot.slane %v402_v13, %v361_v48  ;;  %v745_v24 = vrot.slane %v406_v8, %v361_v48 }
  0x93   :  { %v43_v23 = vpop.permute.xlu0 %42  ;;  %v751_v41 = vpop.permute.xlu1 %356 }
  0x94   :  { %v159_v27 = vmul.f32 %v669_v28, %v43_v23  ;;  %v160_v38 = vmul.f32 %v671_v29, %v43_v23  ;;  %v161_v39 = vmul.f32 %v673_v30, %v43_v23  ;;  %v162_v40 = vmul.f32 %v675_v31, %v43_v23  ;;  %v37_v28 = vld [vmem:[#allocation2 + $0x18] sm:$0x77] }
  0x95   :  { %v163_v43 = vmul.f32 %v677_v32, %v43_v23  ;;  %v164_v44 = vmul.f32 %v679_v33, %v43_v23  ;;  %v165_v45 = vmul.f32 %v681_v34, %v43_v23  ;;  %v166_v48 = vmul.f32 %v683_v35, %v43_v23 }
  0x96   :  { %v167_v29 = vmul.f32 %v685_v36, %v43_v23  ;;  %v168_v30 = vmul.f32 %v687_v37, %v43_v23  ;;  %v169_v51 = vmul.f32 %v154_v46, %v43_v23  ;;  %v170_v31 = vmul.f32 %v158_v47, %v43_v23 }
  0x97   :  { %v183_v62 = vcombine.low %v159_v27, %v160_v38  ;;  %v184_v63 = vcombine.low %v161_v39, %v162_v40  ;;  %v185_v32 = vcombine.low %v163_v43, %v164_v44  ;;  %v186_v0 = vcombine.low %v165_v45, %v166_v48 }
  0x98   :  { %v203_v33 = vpop.permute.xlu0 %202  ;;  %v187_v1 = vcombine.low %v167_v29, %v168_v30  ;;  %v188_v34 = vcombine.low %v169_v51, %v170_v31  ;;  %v467_v35 = vmul.f32 %v422_v18, %v751_v41  ;;  %v468_v2 = vmul.f32 %v426_v19, %v751_v41 }
  0x99   :  { %v195_v3 = vadd.f32 %v183_v62, %v34_v42  ;;  %v196_v4 = vadd.f32 %v184_v63, %v35_v49  ;;  %v197_v36 = vadd.f32 %v185_v32, %v36_v50  ;;  %v198_v5 = vadd.f32 %v186_v0, %v37_v28 }
  0x9a   :  { %v199_v37 = vadd.f32 %v187_v1, %v38_v52  ;;  %v200_v46 = vadd.f32 %v188_v34, %v39_v53  ;;  %v313_v47 = vmul.f32 %v701_v54, %v203_v33  ;;  %v314_v6 = vmul.f32 %v703_v55, %v203_v33 }
  0x9b   :  { %v315_v7 = vmul.f32 %v705_v56, %v203_v33  ;;  %v316_v13 = vmul.f32 %v707_v57, %v203_v33  ;;  %v317_v8 = vmul.f32 %v709_v58, %v203_v33  ;;  %v318_v18 = vmul.f32 %v711_v59, %v203_v33 }
  0x9c   :  { %v319_v19 = vmul.f32 %v713_v60, %v203_v33  ;;  %v320_v23 = vmul.f32 %v715_v61, %v203_v33  ;;  %v321_v27 = vmul.f32 %v300_v14, %v203_v33  ;;  %v322_v38 = vmul.f32 %v304_v16, %v203_v33 }
  0x9d   :  { %v323_v39 = vmul.f32 %v308_v17, %v203_v33  ;;  %v324_v40 = vmul.f32 %v312_v9, %v203_v33  ;;  %v337_v42 = vcombine.low %v313_v47, %v314_v6  ;;  %v338_v54 = vcombine.low %v315_v7, %v316_v13 }
  0x9e   :  { %v339_v43 = vcombine.low %v317_v8, %v318_v18  ;;  %v340_v55 = vcombine.low %v319_v19, %v320_v23  ;;  %v341_v44 = vcombine.low %v321_v27, %v322_v38  ;;  %v469_v56 = vmul.f32 %v430_v20, %v751_v41 }
  0x9f   :  { %v342_v57 = vcombine.low %v323_v39, %v324_v40  ;;  %v349_v45 = vadd.f32 %v337_v42, %v195_v3  ;;  %v350_v58 = vadd.f32 %v338_v54, %v196_v4  ;;  %v470_v59 = vmul.f32 %v729_v10, %v751_v41 }
  0xa0   :  { %v351_v60 = vadd.f32 %v339_v43, %v197_v36  ;;  %v352_v48 = vadd.f32 %v340_v55, %v198_v5  ;;  %v353_v61 = vadd.f32 %v341_v44, %v199_v37  ;;  %v471_v14 = vmul.f32 %v731_v21, %v751_v41 }
  0xa1   :  { %v354_v16 = vadd.f32 %v342_v57, %v200_v46  ;;  %v472_v17 = vmul.f32 %v733_v11, %v751_v41  ;;  %v473_v9 = vmul.f32 %v735_v22, %v751_v41  ;;  %v474_v20 = vmul.f32 %v737_v12, %v751_v41 }
  0xa2   :  { %v475_v49 = vmul.f32 %v739_v25, %v751_v41  ;;  %v476_v10 = vmul.f32 %v741_v15, %v751_v41  ;;  %v477_v50 = vmul.f32 %v743_v26, %v751_v41  ;;  %v478_v21 = vmul.f32 %v745_v24, %v751_v41 }
  0xa3   :  { %v491_v28 = vcombine.low %v467_v35, %v468_v2  ;;  %v492_v11 = vcombine.low %v469_v56, %v470_v59  ;;  %v493_v29 = vcombine.low %v471_v14, %v472_v17  ;;  %v494_v30 = vcombine.low %v473_v9, %v474_v20 }
  0xa4   :  { %v495_v22 = vcombine.low %v475_v49, %v476_v10  ;;  %v496_v12 = vcombine.low %v477_v50, %v478_v21 }
  0xa5   :  { %v503_v51 = vadd.f32 %v491_v28, %v349_v45  ;;  %v504_v31 = vadd.f32 %v492_v11, %v350_v58  ;;  %v505_v25 = vadd.f32 %v493_v29, %v351_v60  ;;  %v506_v52 = vadd.f32 %v494_v30, %v352_v48 }
  0xa6   :  { %v507_v53 = vadd.f32 %v495_v22, %v353_v61  ;;  %v508_v15 = vadd.f32 %v496_v12, %v354_v16 }
  0xa7   :  { %509 = vst [vmem:[#allocation5] sm:$0x77] %v503_v51  ;;  %510 = vst [vmem:[#allocation5 + $0x8] sm:$0x77] %v504_v31 }
  0xa8   :  { %511 = vst [vmem:[#allocation5 + $0x10] sm:$0x77] %v505_v25  ;;  %512 = vst [vmem:[#allocation5 + $0x18] sm:$0x77] %v506_v52 }
  0xa9   :  { %513 = vst [vmem:[#allocation5 + $0x20] sm:$0x77] %v507_v53  ;;  %514 = vst [vmem:[#allocation5 + $0x28] sm:$0x77] %v508_v15 }
  0xaa   :  { %572 = shalt.err (!%p569_p12)
}
  0xab   :  { %s573_s13 = scalar_lea.hbm %s803_s3, 768 }
  0xac   :  { %p574_p13 = scmp.ne.s32.totalorder %s803_s3, %s573_s13  ;;  %p577_p0 = scmp.lt.u32.totalorder %s573_s13, %s803_s3 }
  0xae   :  { %p579_p1 = pnand %p577_p0, %p574_p13 }
  0xb0   :  { %582 = shalt.err (!%p579_p1)
}
  0xb1   :  { %524 = dma.vmem_to_hbm [thread:$0]  %s522_s9, 768, %s803_s3, [#allocation4]  }
  0xb2   :  { %585 = dma.done.wait [#allocation4], 768  }
  0xb3   :  { %586 = vsyncadd [#allocation4], 4294966528 }
  0xb4   :  { %528 = vsyncpa [#allocation3], 1 }
  0xb5   :  { %529 = vsyncpa [#allocation4], 1 }

</bundles_post_ra>
